<compile_context>
chip_gen: v7x
topology: tpu7x:2x2x1
jax: 0.10.0
libtpu: 0.0.40
codegen_flags: <defaults>
</compile_context>

<pallas_src>
import jax
import jax.numpy as jnp
from jax.experimental import pallas as pl
from jax.experimental.pallas import tpu as pltpu


def _simple_rnn_kernel(xf_ref, xm_ref, wy_ref, wx_ref, b1_ref, w2_ref, b2_ref,
                       y_out_ref, prev_y):
    """One GRU_unit step per grid iteration; state carried in VMEM scratch."""
    t = pl.program_id(0)

    @pl.when(t == 0)
    def _():
        prev_y[...] = jnp.zeros_like(prev_y)

    y = prev_y[...]                              # [B, L]  f32 hidden state
    x_feat = xf_ref[...].astype(jnp.float32)     # [B, I]  observed features
    mask = xm_ref[...].astype(jnp.float32)       # [B, 1]  0/1 "any observed"

    def two_layer(g, y_in, x_in):
        # Linear(L+I -> U) with W1 pre-split into Wy/Wx (avoids in-kernel
        # lane-axis concat), then Tanh, then Linear(U -> L).
        h = (jnp.dot(y_in, wy_ref[g], preferred_element_type=jnp.float32)
             + jnp.dot(x_in, wx_ref[g], preferred_element_type=jnp.float32)
             + b1_ref[g])
        h = jnp.tanh(h)
        return jnp.dot(h, w2_ref[g], preferred_element_type=jnp.float32) + b2_ref[g]

    update_gate = jax.nn.sigmoid(two_layer(0, y, x_feat))
    reset_gate = jax.nn.sigmoid(two_layer(1, y, x_feat))
    new_state = two_layer(2, y * reset_gate, x_feat)

    new_y = (1.0 - update_gate) * new_state + update_gate * y
    new_y = mask * new_y + (1.0 - mask) * y      # keep old state where unobserved

    prev_y[...] = new_y
    y_out_ref[...] = new_y.astype(y_out_ref.dtype)


def simple_rnn_forward(data, time_steps, params):
    """Pallas equivalent of Simple_RNN.forward(data, time_steps).

    data:       [n_traj, n_tp, 2*input_dim]  (features | observation mask)
    time_steps: [n_traj, n_tp]
    Returns (yi [1,B,L], latent_ys [B,n_tp-1,L], time_intervals [B,n_tp-1]).
    """
    wy, wx, b1, w2, b2 = params
    n_traj, n_tp, d_full = data.shape
    input_dim = d_full // 2
    _, latent_dim, n_units = wy.shape
    assert wy.shape == (3, latent_dim, n_units)
    assert wx.shape == (3, input_dim, n_units)
    assert b1.shape == (3, 1, n_units)
    assert w2.shape == (3, n_units, latent_dim)
    assert b2.shape == (3, 1, latent_dim)

    B, T, L, U, I = n_traj, n_tp, latent_dim, n_units, input_dim

    # Time-major layout so each grid step's DMA is a contiguous slab; split the
    # feature/mask halves and reduce the mask on the host (one cheap XLA op
    # each) so the kernel body has no lane slicing / lane reduction.
    data_t = jnp.transpose(data, (1, 0, 2))                       # [T, B, 2I]
    x_feat = data_t[..., :I]                                      # [T, B, I]
    x_mask = (jnp.sum(data_t[..., I:], axis=-1, keepdims=True) > 0
              ).astype(data.dtype)                                # [T, B, 1]

    flops = 2 * T * B * 3 * (L * U + I * U + U * L)
    transcendentals = T * B * (3 * U + 2 * L)       # tanh + sigmoid
    bytes_accessed = 4 * (x_feat.size + x_mask.size + wy.size + wx.size
                          + b1.size + w2.size + b2.size + T * B * L)

    latent_ys_t = pl.pallas_call(
        _simple_rnn_kernel,
        out_shape=jax.ShapeDtypeStruct((T, B, L), data.dtype),
        grid=(T,),
        in_specs=[
            # per-step inputs (pipelined over the time grid)
            pl.BlockSpec((pl.Squeezed(), B, I), lambda t: (t, 0, 0)),  # x_feat[t]
            pl.BlockSpec((pl.Squeezed(), B, 1), lambda t: (t, 0, 0)),  # mask[t]
            # weights: full blocks, constant index_map -> VMEM-resident
            pl.BlockSpec((3, L, U), lambda t: (0, 0, 0)),              # Wy
            pl.BlockSpec((3, I, U), lambda t: (0, 0, 0)),              # Wx
            pl.BlockSpec((3, 1, U), lambda t: (0, 0, 0)),              # b1
            pl.BlockSpec((3, U, L), lambda t: (0, 0, 0)),              # W2
            pl.BlockSpec((3, 1, L), lambda t: (0, 0, 0)),              # b2
        ],
        out_specs=pl.BlockSpec((pl.Squeezed(), B, L), lambda t: (t, 0, 0)),
        scratch_shapes=[pltpu.VMEM((B, L), jnp.float32)],              # prev_y
        compiler_params=pltpu.CompilerParams(
            dimension_semantics=("arbitrary",)),   # true recurrence: sequential
        cost_estimate=pl.CostEstimate(
            flops=flops,
            transcendentals=transcendentals,
            bytes_accessed=bytes_accessed),
    )(x_feat, x_mask, wy, wx, b1, w2, b2)

    latent_ys = jnp.transpose(latent_ys_t, (1, 0, 2))   # [B, T, L]
    yi = latent_ys_t[-1][None]                          # [1, B, L] (torch yi)
    time_intervals = time_steps[:, 1:] - time_steps[:, :-1]
    return yi, latent_ys[:, :-1, :], time_intervals


def init_gru_unit_params(key, latent_dim, input_dim, n_units, dtype=jnp.float32):
    """Synthetic GRU_unit params: 3 two-layer MLPs (update, reset, new_state).

    Stored [in, out] (math-identical to PyTorch's nn.Linear with W transposed),
    with the first layer pre-split into the y-part (Wy) and x-part (Wx).
    """
    keys = jax.random.split(key, 15)
    s1 = 1.0 / jnp.sqrt(latent_dim + input_dim)
    s2 = 1.0 / jnp.sqrt(n_units)

    def u(k, shape, s):
        return jax.random.uniform(k, shape, dtype, -s, s)

    wy = jnp.stack([u(keys[5 * g + 0], (latent_dim, n_units), s1) for g in range(3)])
    wx = jnp.stack([u(keys[5 * g + 1], (input_dim, n_units), s1) for g in range(3)])
    b1 = jnp.stack([u(keys[5 * g + 2], (1, n_units), s1) for g in range(3)])
    w2 = jnp.stack([u(keys[5 * g + 3], (n_units, latent_dim), s2) for g in range(3)])
    b2 = jnp.stack([u(keys[5 * g + 4], (1, latent_dim), s2) for g in range(3)])
    return wy, wx, b1, w2, b2


def _reference(data, time_steps, params):
    """Pure-JAX re-implementation of Simple_RNN.forward for verification."""
    wy, wx, b1, w2, b2 = params
    n_traj, n_tp, d_full = data.shape
    I = d_full // 2
    L = wy.shape[1]

    def mlp(g, y_in, x_in):
        h = jnp.tanh(y_in @ wy[g] + x_in @ wx[g] + b1[g])
        return h @ w2[g] + b2[g]

    prev_y = jnp.zeros((n_traj, L), jnp.float32)
    ys = []
    for t in range(n_tp):
        xt = data[:, t, :]
        xf, xm = xt[:, :I], xt[:, I:]
        u_g = jax.nn.sigmoid(mlp(0, prev_y, xf))
        r_g = jax.nn.sigmoid(mlp(1, prev_y, xf))
        ns = mlp(2, prev_y * r_g, xf)
        new_y = (1.0 - u_g) * ns + u_g * prev_y
        m = (jnp.sum(xm, -1, keepdims=True) > 0).astype(jnp.float32)
        new_y = m * new_y + (1.0 - m) * prev_y
        ys.append(new_y)
        prev_y = new_y
    latent_ys = jnp.stack(ys, axis=1)                    # [B, T, L]
    yi = prev_y[None]                                    # [1, B, L]
    time_intervals = time_steps[:, 1:] - time_steps[:, :-1]
    return yi, latent_ys[:, :-1, :], time_intervals


if __name__ == "__main__":
    key = jax.random.PRNGKey(0)
    kd, kt, kp, km = jax.random.split(key, 4)

    n_traj, n_tp = 8, 8
    latent_dim, input_dim, n_units = 32, 16, 64

    feats = jax.random.normal(kd, (n_traj, n_tp, input_dim), jnp.float32)
    obs_mask = (jax.random.uniform(km, (n_traj, n_tp, input_dim)) > 0.3
                ).astype(jnp.float32)
    data = jnp.concatenate([feats, obs_mask], axis=-1)         # [B, T, 2I]
    time_steps = jnp.cumsum(
        jax.random.uniform(kt, (n_traj, n_tp), jnp.float32, 0.1, 1.0), axis=-1)

    params = init_gru_unit_params(kp, latent_dim, input_dim, n_units)

    yi, latent_ys, time_intervals = simple_rnn_forward(data, time_steps, params)
    jax.block_until_ready((yi, latent_ys, time_intervals))

    ref_yi, ref_latent_ys, ref_ti = _reference(data, time_steps, params)

    assert yi.shape == (1, n_traj, latent_dim)
    assert latent_ys.shape == (n_traj, n_tp - 1, latent_dim)
    assert time_intervals.shape == (n_traj, n_tp - 1)
    assert jnp.allclose(yi, ref_yi, atol=1e-5, rtol=1e-5)
    assert jnp.allclose(latent_ys, ref_latent_ys, atol=1e-5, rtol=1e-5)
    assert jnp.allclose(time_intervals, ref_ti, atol=1e-6)

    print("KERNEL_OK")
</pallas_src>

<mosaic_0001>
module attributes {stable_mosaic.version = 11 : i64} {
  func.func @_simple_rnn_kernel(%arg0: i32, %arg1: memref<1x8x16xf32, #tpu.memory_space<vmem>>, %arg2: memref<1x8x1xf32, #tpu.memory_space<vmem>>, %arg3: memref<3x32x64xf32, #tpu.memory_space<vmem>>, %arg4: memref<3x16x64xf32, #tpu.memory_space<vmem>>, %arg5: memref<3x1x64xf32, #tpu.memory_space<vmem>>, %arg6: memref<3x64x32xf32, #tpu.memory_space<vmem>>, %arg7: memref<3x1x32xf32, #tpu.memory_space<vmem>>, %arg8: memref<1x8x32xf32, #tpu.memory_space<vmem>>, %arg9: memref<8x32xf32, #tpu.memory_space<vmem>>) attributes {dimension_semantics = [#tpu.dimension_semantics<arbitrary>], iteration_bounds = array<i64: 8>, scalar_prefetch = 0 : i64, scratch_operands = 1 : i64, tpu.core_type = #tpu.core_type<tc>, window_params = [{transform_indices = @transform_0, window_bounds = array<i64: 1, 8, 16>}, {transform_indices = @transform_1, window_bounds = array<i64: 1, 8, 1>}, {pipeline_mode = #tpu.pipeline_mode<synchronous>, transform_indices = @transform_2, window_bounds = array<i64: 3, 32, 64>}, {pipeline_mode = #tpu.pipeline_mode<synchronous>, transform_indices = @transform_3, window_bounds = array<i64: 3, 16, 64>}, {pipeline_mode = #tpu.pipeline_mode<synchronous>, transform_indices = @transform_4, window_bounds = array<i64: 3, 1, 64>}, {pipeline_mode = #tpu.pipeline_mode<synchronous>, transform_indices = @transform_5, window_bounds = array<i64: 3, 64, 32>}, {pipeline_mode = #tpu.pipeline_mode<synchronous>, transform_indices = @transform_6, window_bounds = array<i64: 3, 1, 32>}, {transform_indices = @transform_7, window_bounds = array<i64: 1, 8, 32>}]} {
    %c0_i32 = arith.constant 0 : i32
    %0 = arith.cmpi eq, %arg0, %c0_i32 : i32
    %1 = arith.extui %0 : i1 to i32
    %c0_i32_0 = arith.constant 0 : i32
    %2 = arith.cmpi ne, %1, %c0_i32_0 : i32
    scf.if %2 {
      %cst_68 = arith.constant 0.000000e+00 : f32
      %92 = vector.broadcast %cst_68 : f32 to vector<8x32xf32>
      %c0_69 = arith.constant 0 : index
      %c0_70 = arith.constant 0 : index
      %93 = vector.load %arg9[%c0_69, %c0_70] : memref<8x32xf32, #tpu.memory_space<vmem>>, vector<8x32xf32>
      tpu.vector_store %arg9[%c0_69, %c0_70], %92 {strides = array<i32>} : memref<8x32xf32, #tpu.memory_space<vmem>>, vector<8x32xf32>,
    } else {
    }
    %c0 = arith.constant 0 : index
    %c0_1 = arith.constant 0 : index
    %3 = vector.load %arg9[%c0, %c0_1] : memref<8x32xf32, #tpu.memory_space<vmem>>, vector<8x32xf32>
    %c0_2 = arith.constant 0 : index
    %c0_3 = arith.constant 0 : index
    %c0_4 = arith.constant 0 : index
    %4 = vector.load %arg1[%c0_2, %c0_3, %c0_4] : memref<1x8x16xf32, #tpu.memory_space<vmem>>, vector<1x8x16xf32>
    %5 = vector.shape_cast %4 : vector<1x8x16xf32> to vector<8x16xf32>
    %c0_5 = arith.constant 0 : index
    %c0_6 = arith.constant 0 : index
    %c0_7 = arith.constant 0 : index
    %6 = vector.load %arg2[%c0_5, %c0_6, %c0_7] : memref<1x8x1xf32, #tpu.memory_space<vmem>>, vector<1x8x1xf32>
    %7 = vector.shape_cast %6 : vector<1x8x1xf32> to vector<8x1xf32>
    %c0_8 = arith.constant 0 : index
    %c0_9 = arith.constant 0 : index
    %c0_10 = arith.constant 0 : index
    %8 = vector.load %arg3[%c0_8, %c0_9, %c0_10] : memref<3x32x64xf32, #tpu.memory_space<vmem>>, vector<1x32x64xf32>
    %9 = vector.shape_cast %8 : vector<1x32x64xf32> to vector<32x64xf32>
    %cst = arith.constant dense<0.000000e+00> : vector<8x64xf32>
    %10 = tpu.matmul %3, %9, %cst {dimension_numbers = #tpu.dot_dimension_numbers<[1], [0], [0], [1], [0, 0, 1, 1], [], []>} : vector<8x32xf32>, vector<32x64xf32>, vector<8x64xf32> -> vector<8x64xf32>
    %c0_11 = arith.constant 0 : index
    %c0_12 = arith.constant 0 : index
    %c0_13 = arith.constant 0 : index
    %11 = vector.load %arg4[%c0_11, %c0_12, %c0_13] : memref<3x16x64xf32, #tpu.memory_space<vmem>>, vector<1x16x64xf32>
    %12 = vector.shape_cast %11 : vector<1x16x64xf32> to vector<16x64xf32>
    %cst_14 = arith.constant dense<0.000000e+00> : vector<8x64xf32>
    %13 = tpu.matmul %5, %12, %cst_14 {dimension_numbers = #tpu.dot_dimension_numbers<[1], [0], [0], [1], [0, 0, 1, 1], [], []>} : vector<8x16xf32>, vector<16x64xf32>, vector<8x64xf32> -> vector<8x64xf32>
    %14 = arith.addf %10, %13 : vector<8x64xf32>
    %c0_15 = arith.constant 0 : index
    %c0_16 = arith.constant 0 : index
    %c0_17 = arith.constant 0 : index
    %15 = vector.load %arg5[%c0_15, %c0_16, %c0_17] : memref<3x1x64xf32, #tpu.memory_space<vmem>>, vector<1x1x64xf32>
    %16 = vector.shape_cast %15 : vector<1x1x64xf32> to vector<1x64xf32>
    %17 = vector.broadcast %16 : vector<1x64xf32> to vector<8x64xf32>
    %18 = arith.addf %14, %17 : vector<8x64xf32>
    %19 = math.tanh %18 : vector<8x64xf32>
    %c0_18 = arith.constant 0 : index
    %c0_19 = arith.constant 0 : index
    %c0_20 = arith.constant 0 : index
    %20 = vector.load %arg6[%c0_18, %c0_19, %c0_20] : memref<3x64x32xf32, #tpu.memory_space<vmem>>, vector<1x64x32xf32>
    %21 = vector.shape_cast %20 : vector<1x64x32xf32> to vector<64x32xf32>
    %cst_21 = arith.constant dense<0.000000e+00> : vector<8x32xf32>
    %22 = tpu.matmul %19, %21, %cst_21 {dimension_numbers = #tpu.dot_dimension_numbers<[1], [0], [0], [1], [0, 0, 1, 1], [], []>} : vector<8x64xf32>, vector<64x32xf32>, vector<8x32xf32> -> vector<8x32xf32>
    %c0_22 = arith.constant 0 : index
    %c0_23 = arith.constant 0 : index
    %c0_24 = arith.constant 0 : index
    %23 = vector.load %arg7[%c0_22, %c0_23, %c0_24] : memref<3x1x32xf32, #tpu.memory_space<vmem>>, vector<1x1x32xf32>
    %24 = vector.shape_cast %23 : vector<1x1x32xf32> to vector<1x32xf32>
    %25 = vector.broadcast %24 : vector<1x32xf32> to vector<8x32xf32>
    %26 = arith.addf %22, %25 : vector<8x32xf32>
    %27 = arith.negf %26 : vector<8x32xf32>
    %28 = math.exp %27 : vector<8x32xf32>
    %cst_25 = arith.constant 1.000000e+00 : f32
    %29 = vector.broadcast %cst_25 : f32 to vector<8x32xf32>
    %30 = arith.addf %29, %28 : vector<8x32xf32>
    %31 = arith.divf %29, %30 : vector<8x32xf32>
    %c1 = arith.constant 1 : index
    %c0_26 = arith.constant 0 : index
    %c0_27 = arith.constant 0 : index
    %32 = vector.load %arg3[%c1, %c0_26, %c0_27] : memref<3x32x64xf32, #tpu.memory_space<vmem>>, vector<1x32x64xf32>
    %33 = vector.shape_cast %32 : vector<1x32x64xf32> to vector<32x64xf32>
    %cst_28 = arith.constant dense<0.000000e+00> : vector<8x64xf32>
    %34 = tpu.matmul %3, %33, %cst_28 {dimension_numbers = #tpu.dot_dimension_numbers<[1], [0], [0], [1], [0, 0, 1, 1], [], []>} : vector<8x32xf32>, vector<32x64xf32>, vector<8x64xf32> -> vector<8x64xf32>
    %c1_29 = arith.constant 1 : index
    %c0_30 = arith.constant 0 : index
    %c0_31 = arith.constant 0 : index
    %35 = vector.load %arg4[%c1_29, %c0_30, %c0_31] : memref<3x16x64xf32, #tpu.memory_space<vmem>>, vector<1x16x64xf32>
    %36 = vector.shape_cast %35 : vector<1x16x64xf32> to vector<16x64xf32>
    %cst_32 = arith.constant dense<0.000000e+00> : vector<8x64xf32>
    %37 = tpu.matmul %5, %36, %cst_32 {dimension_numbers = #tpu.dot_dimension_numbers<[1], [0], [0], [1], [0, 0, 1, 1], [], []>} : vector<8x16xf32>, vector<16x64xf32>, vector<8x64xf32> -> vector<8x64xf32>
    %38 = arith.addf %34, %37 : vector<8x64xf32>
    %c1_33 = arith.constant 1 : index
    %c0_34 = arith.constant 0 : index
    %c0_35 = arith.constant 0 : index
    %39 = vector.load %arg5[%c1_33, %c0_34, %c0_35] : memref<3x1x64xf32, #tpu.memory_space<vmem>>, vector<1x1x64xf32>
    %40 = vector.shape_cast %39 : vector<1x1x64xf32> to vector<1x64xf32>
    %41 = vector.broadcast %40 : vector<1x64xf32> to vector<8x64xf32>
    %42 = arith.addf %38, %41 : vector<8x64xf32>
    %43 = math.tanh %42 : vector<8x64xf32>
    %c1_36 = arith.constant 1 : index
    %c0_37 = arith.constant 0 : index
    %c0_38 = arith.constant 0 : index
    %44 = vector.load %arg6[%c1_36, %c0_37, %c0_38] : memref<3x64x32xf32, #tpu.memory_space<vmem>>, vector<1x64x32xf32>
    %45 = vector.shape_cast %44 : vector<1x64x32xf32> to vector<64x32xf32>
    %cst_39 = arith.constant dense<0.000000e+00> : vector<8x32xf32>
    %46 = tpu.matmul %43, %45, %cst_39 {dimension_numbers = #tpu.dot_dimension_numbers<[1], [0], [0], [1], [0, 0, 1, 1], [], []>} : vector<8x64xf32>, vector<64x32xf32>, vector<8x32xf32> -> vector<8x32xf32>
    %c1_40 = arith.constant 1 : index
    %c0_41 = arith.constant 0 : index
    %c0_42 = arith.constant 0 : index
    %47 = vector.load %arg7[%c1_40, %c0_41, %c0_42] : memref<3x1x32xf32, #tpu.memory_space<vmem>>, vector<1x1x32xf32>
    %48 = vector.shape_cast %47 : vector<1x1x32xf32> to vector<1x32xf32>
    %49 = vector.broadcast %48 : vector<1x32xf32> to vector<8x32xf32>
    %50 = arith.addf %46, %49 : vector<8x32xf32>
    %51 = arith.negf %50 : vector<8x32xf32>
    %52 = math.exp %51 : vector<8x32xf32>
    %cst_43 = arith.constant 1.000000e+00 : f32
    %53 = vector.broadcast %cst_43 : f32 to vector<8x32xf32>
    %54 = arith.addf %53, %52 : vector<8x32xf32>
    %55 = arith.divf %53, %54 : vector<8x32xf32>
    %56 = arith.mulf %3, %55 : vector<8x32xf32>
    %c2 = arith.constant 2 : index
    %c0_44 = arith.constant 0 : index
    %c0_45 = arith.constant 0 : index
    %57 = vector.load %arg3[%c2, %c0_44, %c0_45] : memref<3x32x64xf32, #tpu.memory_space<vmem>>, vector<1x32x64xf32>
    %58 = vector.shape_cast %57 : vector<1x32x64xf32> to vector<32x64xf32>
    %cst_46 = arith.constant dense<0.000000e+00> : vector<8x64xf32>
    %59 = tpu.matmul %56, %58, %cst_46 {dimension_numbers = #tpu.dot_dimension_numbers<[1], [0], [0], [1], [0, 0, 1, 1], [], []>} : vector<8x32xf32>, vector<32x64xf32>, vector<8x64xf32> -> vector<8x64xf32>
    %c2_47 = arith.constant 2 : index
    %c0_48 = arith.constant 0 : index
    %c0_49 = arith.constant 0 : index
    %60 = vector.load %arg4[%c2_47, %c0_48, %c0_49] : memref<3x16x64xf32, #tpu.memory_space<vmem>>, vector<1x16x64xf32>
    %61 = vector.shape_cast %60 : vector<1x16x64xf32> to vector<16x64xf32>
    %cst_50 = arith.constant dense<0.000000e+00> : vector<8x64xf32>
    %62 = tpu.matmul %5, %61, %cst_50 {dimension_numbers = #tpu.dot_dimension_numbers<[1], [0], [0], [1], [0, 0, 1, 1], [], []>} : vector<8x16xf32>, vector<16x64xf32>, vector<8x64xf32> -> vector<8x64xf32>
    %63 = arith.addf %59, %62 : vector<8x64xf32>
    %c2_51 = arith.constant 2 : index
    %c0_52 = arith.constant 0 : index
    %c0_53 = arith.constant 0 : index
    %64 = vector.load %arg5[%c2_51, %c0_52, %c0_53] : memref<3x1x64xf32, #tpu.memory_space<vmem>>, vector<1x1x64xf32>
    %65 = vector.shape_cast %64 : vector<1x1x64xf32> to vector<1x64xf32>
    %66 = vector.broadcast %65 : vector<1x64xf32> to vector<8x64xf32>
    %67 = arith.addf %63, %66 : vector<8x64xf32>
    %68 = math.tanh %67 : vector<8x64xf32>
    %c2_54 = arith.constant 2 : index
    %c0_55 = arith.constant 0 : index
    %c0_56 = arith.constant 0 : index
    %69 = vector.load %arg6[%c2_54, %c0_55, %c0_56] : memref<3x64x32xf32, #tpu.memory_space<vmem>>, vector<1x64x32xf32>
    %70 = vector.shape_cast %69 : vector<1x64x32xf32> to vector<64x32xf32>
    %cst_57 = arith.constant dense<0.000000e+00> : vector<8x32xf32>
    %71 = tpu.matmul %68, %70, %cst_57 {dimension_numbers = #tpu.dot_dimension_numbers<[1], [0], [0], [1], [0, 0, 1, 1], [], []>} : vector<8x64xf32>, vector<64x32xf32>, vector<8x32xf32> -> vector<8x32xf32>
    %c2_58 = arith.constant 2 : index
    %c0_59 = arith.constant 0 : index
    %c0_60 = arith.constant 0 : index
    %72 = vector.load %arg7[%c2_58, %c0_59, %c0_60] : memref<3x1x32xf32, #tpu.memory_space<vmem>>, vector<1x1x32xf32>
    %73 = vector.shape_cast %72 : vector<1x1x32xf32> to vector<1x32xf32>
    %74 = vector.broadcast %73 : vector<1x32xf32> to vector<8x32xf32>
    %75 = arith.addf %71, %74 : vector<8x32xf32>
    %cst_61 = arith.constant 1.000000e+00 : f32
    %76 = vector.broadcast %cst_61 : f32 to vector<8x32xf32>
    %77 = arith.subf %76, %31 : vector<8x32xf32>
    %78 = arith.mulf %77, %75 : vector<8x32xf32>
    %79 = arith.mulf %31, %3 : vector<8x32xf32>
    %80 = arith.addf %78, %79 : vector<8x32xf32>
    %81 = vector.broadcast %7 : vector<8x1xf32> to vector<8x32xf32>
    %82 = arith.mulf %81, %80 : vector<8x32xf32>
    %cst_62 = arith.constant 1.000000e+00 : f32
    %83 = vector.broadcast %cst_62 : f32 to vector<8x1xf32>
    %84 = arith.subf %83, %7 : vector<8x1xf32>
    %85 = vector.broadcast %84 : vector<8x1xf32> to vector<8x32xf32>
    %86 = arith.mulf %85, %3 : vector<8x32xf32>
    %87 = arith.addf %82, %86 : vector<8x32xf32>
    %c0_63 = arith.constant 0 : index
    %c0_64 = arith.constant 0 : index
    %88 = vector.load %arg9[%c0_63, %c0_64] : memref<8x32xf32, #tpu.memory_space<vmem>>, vector<8x32xf32>
    tpu.vector_store %arg9[%c0_63, %c0_64], %87 {strides = array<i32>} : memref<8x32xf32, #tpu.memory_space<vmem>>, vector<8x32xf32>,
    %c0_65 = arith.constant 0 : index
    %c0_66 = arith.constant 0 : index
    %c0_67 = arith.constant 0 : index
    %89 = vector.load %arg8[%c0_65, %c0_66, %c0_67] : memref<1x8x32xf32, #tpu.memory_space<vmem>>, vector<1x8x32xf32>
    %90 = vector.shape_cast %89 : vector<1x8x32xf32> to vector<8x32xf32>
    %91 = vector.shape_cast %87 : vector<8x32xf32> to vector<1x8x32xf32>
    tpu.vector_store %arg8[%c0_65, %c0_66, %c0_67], %91 {strides = array<i32>} : memref<1x8x32xf32, #tpu.memory_space<vmem>>, vector<1x8x32xf32>,
    return
  }
  func.func @transform_0(%arg0: i32) -> (i32, i32, i32) {
    %c0_i32 = arith.constant 0 : i32
    %c0_i32_0 = arith.constant 0 : i32
    %c0_i32_1 = arith.constant 0 : i32
    return %arg0, %c0_i32, %c0_i32_0 : i32, i32, i32
  }
  func.func @transform_1(%arg0: i32) -> (i32, i32, i32) {
    %c0_i32 = arith.constant 0 : i32
    %c0_i32_0 = arith.constant 0 : i32
    %c0_i32_1 = arith.constant 0 : i32
    return %arg0, %c0_i32, %c0_i32_0 : i32, i32, i32
  }
  func.func @transform_2(%arg0: i32) -> (i32, i32, i32) {
    %c0_i32 = arith.constant 0 : i32
    %c0_i32_0 = arith.constant 0 : i32
    %c0_i32_1 = arith.constant 0 : i32
    %c0_i32_2 = arith.constant 0 : i32
    return %c0_i32, %c0_i32_0, %c0_i32_1 : i32, i32, i32
  }
  func.func @transform_3(%arg0: i32) -> (i32, i32, i32) {
    %c0_i32 = arith.constant 0 : i32
    %c0_i32_0 = arith.constant 0 : i32
    %c0_i32_1 = arith.constant 0 : i32
    %c0_i32_2 = arith.constant 0 : i32
    return %c0_i32, %c0_i32_0, %c0_i32_1 : i32, i32, i32
  }
  func.func @transform_4(%arg0: i32) -> (i32, i32, i32) {
    %c0_i32 = arith.constant 0 : i32
    %c0_i32_0 = arith.constant 0 : i32
    %c0_i32_1 = arith.constant 0 : i32
    %c0_i32_2 = arith.constant 0 : i32
    return %c0_i32, %c0_i32_0, %c0_i32_1 : i32, i32, i32
  }
  func.func @transform_5(%arg0: i32) -> (i32, i32, i32) {
    %c0_i32 = arith.constant 0 : i32
    %c0_i32_0 = arith.constant 0 : i32
    %c0_i32_1 = arith.constant 0 : i32
    %c0_i32_2 = arith.constant 0 : i32
    return %c0_i32, %c0_i32_0, %c0_i32_1 : i32, i32, i32
  }
  func.func @transform_6(%arg0: i32) -> (i32, i32, i32) {
    %c0_i32 = arith.constant 0 : i32
    %c0_i32_0 = arith.constant 0 : i32
    %c0_i32_1 = arith.constant 0 : i32
    %c0_i32_2 = arith.constant 0 : i32
    return %c0_i32, %c0_i32_0, %c0_i32_1 : i32, i32, i32
  }
  func.func @transform_7(%arg0: i32) -> (i32, i32, i32) {
    %c0_i32 = arith.constant 0 : i32
    %c0_i32_0 = arith.constant 0 : i32
    %c0_i32_1 = arith.constant 0 : i32
    return %arg0, %c0_i32, %c0_i32_0 : i32, i32, i32
  }
}

</mosaic_0001>

<bundles_post_ra>
// kernel: tpu_custom_call.1
= control target key start
LH: loop header
LB: loop body
LE: loop exit
PB: predicated region body
PF: predicated region fallthrough
CT: control target
= control target key end

     0   :  { %12 = vsyncpa [#allocation4], 0  ;;  %s1948_s0 = inlined_call_operand.vmem [shape: f32[8,8,16], index: 0, kind: input, shape index: {}]   ;;  %s1949_s1 = inlined_call_operand.vmem [shape: f32[8,8,1], index: 1, kind: input, shape index: {}]   ;;  %s1950_s2 = inlined_call_operand.vmem [shape: f32[3,32,64], index: 2, kind: input, shape index: {}]   ;;  %s1951_s3 = inlined_call_operand.vmem [shape: f32[3,16,64], index: 3, kind: input, shape index: {}]   ;;  %s1952_s4 = inlined_call_operand.vmem [shape: f32[3,1,64], index: 4, kind: input, shape index: {}]   ;;  %s1953_s5 = inlined_call_operand.vmem [shape: f32[3,64,32], index: 5, kind: input, shape index: {}]   ;;  %s1954_s6 = inlined_call_operand.vmem [shape: f32[3,1,32], index: 6, kind: input, shape index: {}]   ;;  %s1955_s7 = inlined_call_operand.hbm [shape: f32[8,8,32], index: 7, kind: output, shape index: {}]  }
   0x1   :  { %14 = vsyncpa [#allocation4 + $0x1], 0  ;;  %s1624_s24 = smov 0   ;;  %s1626_s25 = smov 0  }
   0x2   :  { %s1628_s26 = smov 0   ;;  %s1630_s27 = smov 0  }
   0x3 LB: > { %s1645_s28 = sadd.s32 4294967295, %s1576_s27   ;;  %s1169_s29 = sadd.s32 4294967294, %s1576_s27   ;;  %s1576_s27 = sphi %s1630_s27, %s1961_s27   ;;  %s1572_s26 = sphi %s1628_s26, %s1960_s26   ;;  %s1568_s25 = sphi %s1626_s25, %s1959_s25   ;;  %s1564_s24 = sphi %s1624_s24, %s1958_s24  }
   0x4   : > { %s1649_s30 = sadd.s32 1, %s1576_s27   ;;  %s184_s8 = sadd.s32 1, %s1572_s26 }
   0x5   : > { %s181_s9 = ssub.s32 %s1576_s27, %s1649_s30  ;;  %p194_p0 = scmp.ne.s32.totalorder %s1572_s26, %s1568_s25 }
   0x6   : > { %p182_p1 = scmp.eq.s32.totalorder %s181_s9, 0  ;;  %p195_p2 = scmp.eq.s32.totalorder %s1645_s28, 7 }
   0x7   : > { %p200_p3 = scmp.ne.s32.totalorder %s1568_s25, %s1564_s24  ;;  %p201_p4 = scmp.eq.s32.totalorder %s1169_s29, 7 }
   0x8   : > { %s1660_s10 = scalar_select %p182_p1, %s1572_s26, %s184_s8  }
   0x9   : > { %p1662_p5 = por %p195_p2, %p194_p0  ;;  %p1666_p6 = por %p201_p4, %p200_p3 }
   0xa   : > { %p1172_p7 = scmp.ge.s32.totalorder %s1576_s27, 1  ;;  %p248_p8 = scmp.lt.s32.totalorder %s1576_s27, 9 }
   0xc   : > { %p249_p9 = pnand %p1172_p7, %p248_p8 }
   0xd   : > { %s280_s13 = sand.u32 (!%p249_p9), 1, %s1568_s25   ;;  %p283_p10 = scmp.lt.s32.totalorder (!%p249_p9), %s1645_s28, 7 }
   0xe   : > { %252 = sbr.rel (%p249_p9) target bundleno = 991 (0x3df), region = 48  ;;  %s1676_s14 = sshll.u32 (!%p249_p9), %s280_s13, 3 }
   0xf   : > { %s282_s23 = scalar_lea.vmem (!%p249_p9), [#allocation3], %s1676_s14  ;;  %p1176_p11 = scmp.ne.s32.totalorder (!%p249_p9), %s1645_s28, 0 }
  0x15   : > { %s284_s15 = scalar_select %p283_p10, %s1645_s28, 7 }
  0x16   : > { %294 = sbr.rel (%p1176_p11) target bundleno = 29 (0x1d), region = 52  ;;  %vm295_vm0 = vcmask (!%p1176_p11), 261120   ;;  %v1578_v0 = vmov (!%p1176_p11), 0.0  }
  0x17   : > { %s1174_s16 = sshll.u32 %s284_s15, 3  ;;  %296 = vst.msk [vmem:[#allocation2] sm:$0xff] (!%p1176_p11), %vm295_vm0, %v1578_v0 }
  0x18   : > { %s286_s19 = scalar_lea.vmem %s1948_s0, %s1174_s16  ;;  %s1685_s22 = scalar_lea.vmem %s1949_s1, %s1174_s16 }
  0x1d PF: > { %v304_v1 = vld [vmem:[%s1951_s3] sm:$0xff]  ;;  %v305_v2 = vld [vmem:[%s1951_s3 + $0x8] sm:$0xff]  ;;  %v1579_v3 = vmov 0.0|0.0   ;;  %vm1580_vm1 = vmmov 0   ;;  %v1581_v5 = vmov 0.0   ;;  %v1187_v8 = vld [vmem:[%s1951_s3 + $0x10] sm:$0xff] }
  0x1e   : > { %1392 = vmatprep.subr.bf16.mxu0 %v1579_v3  ;;  %v1393_v4 = vpack.c.bf16 %v305_v2, %v304_v1  ;;  %1285 = vmatprep.mubr.msk.f32.mxu0 %vm1580_vm1, %v1581_v5  ;;  %v300_v6 = vld [vmem:[%s1950_s2] sm:$0xff]  ;;  %v301_v7 = vld [vmem:[%s1950_s2 + $0x8] sm:$0xff]  ;;  %v1188_v9 = vld [vmem:[%s1951_s3 + $0x18] sm:$0xff]  ;;  %vm306_vm2 = vcmask 130048   ;;  %vm380_vm3 = vcmask 261120   ;;  %vm478_vm4 = vcmask 523264  }
  0x1f   : > { %1413 = vmatprep.subr.bf16.mxu1 %v1579_v3  ;;  %1322 = vmatprep.mubr.msk.f32.mxu1 %vm1580_vm1, %v1581_v5  ;;  %v1713_v10 = vld [vmem:[%s286_s19] sm:$0xff]  ;;  %v1396_v11 = vpack.c.bf16 %v301_v7, %v300_v6  ;;  %v1414_v12 = vpack.c.bf16 %v1188_v9, %v1187_v8  ;;  %v1184_v14 = vld [vmem:[%s1950_s2 + $0x28] sm:$0xff]  ;;  %v302_v15 = vld [vmem:[%s1950_s2 + $0x10] sm:$0xff]  ;;  %s1227_s18 = sshll.u32 %s1645_s28, 7  ;;  %s1098_s20 = sshll.u32 %s282_s23, 4  ;;  %s1902_s20 = int_to_ptr.vmem [resolvable:$true] %s1098_s20 }
  0x20   : > { %1394 = vmatpush3.bf16.msra.mxu0 %v1393_v4  ;;  %v1183_v13 = vld [vmem:[%s1950_s2 + $0x20] sm:$0xff]  ;;  %v303_v16 = vld [vmem:[%s1950_s2 + $0x18] sm:$0xff]  ;;  %v1185_v18 = vld [vmem:[%s1950_s2 + $0x30] sm:$0xff]  ;;  %s1900_s19 = scalar_lea.hbm %s1955_s7, %s1227_s18  ;;  %s1085_s28 = scalar_lea.sflag [#allocation4], %s280_s13 }
  0x21   : > { %1395 = vmatprep.subr.bf16.mxu0 %v1579_v3  ;;  %1415 = vmatpush3.bf16.msra.mxu1 %v1414_v12  ;;  %v1417_v17 = vpack.c.bf16 %v1184_v14, %v1183_v13  ;;  %v1186_v19 = vld [vmem:[%s1950_s2 + $0x38] sm:$0xff]  ;;  %v1399_v20 = vpack.c.bf16 %v303_v16, %v302_v15  ;;  %v1745_v22 = vld [vmem:[#allocation2] sm:$0xff]  ;;  %v464_v24 = vld [vmem:[%s1953_s5 + $0x8] sm:$0xff]  ;;  %s1514_s8 = scalar_lea.vmem %s1902_s20, 128  ;;  %s1583_s9 = smov [#allocation3]  }
  0x22   : > { %1416 = vmatprep.subr.bf16.mxu1 %v1579_v3  ;;  %v1420_v21 = vpack.c.bf16 %v1186_v19, %v1185_v18  ;;  %v463_v23 = vld [vmem:[%s1953_s5] sm:$0xff]  ;;  %v465_v26 = vld [vmem:[%s1953_s5 + $0x10] sm:$0xff]  ;;  %v466_v27 = vld [vmem:[%s1953_s5 + $0x18] sm:$0xff]  ;;  %p1515_p12 = scmp.ne.s32.totalorder %s1902_s20, %s1514_s8  ;;  %s1518_s15 = sshll.u32 %s1583_s9, 4  ;;  %s1519_s15 = int_to_ptr.vmem [resolvable:$false] %s1518_s15 }
  0x23   : > { %1286 = vmatmul.mubr.msk.f32.vlgmr.msra.gmra.mrb[0].mxu0 %vm306_vm2, %v1713_v10  ;;  %v1402_v25 = vpack.c.bf16 %v464_v24, %v463_v23  ;;  %v1405_v28 = vpack.c.bf16 %v466_v27, %v465_v26  ;;  %v467_v29 = vld [vmem:[%s1953_s5 + $0x20] sm:$0xff]  ;;  %v468_v30 = vld [vmem:[%s1953_s5 + $0x28] sm:$0xff]  ;;  %v469_v32 = vld [vmem:[%s1953_s5 + $0x30] sm:$0xff]  ;;  %s1520_s16 = scalar_lea.vmem %s1519_s15, 256  ;;  %p1521_p1 = scmp.lt.s32.totalorder %s1902_s20, %s1519_s15 }
  0x24   : > { %1397 = vmatpush3.bf16.msra.mxu0 %v1396_v11  ;;  %1296 = vmatprep.mubr.msk.f32.mxu0 %vm1580_vm1, %v1581_v5  ;;  %v1408_v31 = vpack.c.bf16 %v468_v30, %v467_v29  ;;  %v470_v33 = vld [vmem:[%s1953_s5 + $0x38] sm:$0xff]  ;;  %v1179_v40 = vld [vmem:[%s1952_s4] ss:$0 sm:$0xff]  ;;  %v1194_v48 = vld [vmem:[%s1953_s5 + $0x48] sm:$0xff]  ;;  %p1516_p13 = pnand %p1515_p12, %p1662_p5  ;;  %p1522_p2 = scmp.lt.s32.totalorder %s1520_s16, %s1514_s8 }
  0x25   : > { %1398 = vmatprep.subr.bf16.mxu0 %v1579_v3  ;;  %1323 = vmatmul.mubr.msk.f32.vlgmr.msra.gmra.mrb[0].mxu1 %vm306_vm2, %v1713_v10  ;;  %v1411_v34 = vpack.c.bf16 %v470_v33, %v469_v32  ;;  %v1193_v47 = vld [vmem:[%s1953_s5 + $0x40] sm:$0xff]  ;;  %v1195_v51 = vld [vmem:[%s1953_s5 + $0x50] sm:$0xff]  ;;  %v1196_v52 = vld [vmem:[%s1953_s5 + $0x58] sm:$0xff] }
  0x26   : > { %1418 = vmatpush3.bf16.msra.mxu1 %v1417_v17  ;;  %1333 = vmatprep.mubr.msk.f32.mxu1 %vm1580_vm1, %v1581_v5  ;;  %v1423_v49 = vpack.c.bf16 %v1194_v48, %v1193_v47  ;;  %v1192_v50 = vld [vmem:[%s1952_s4 + $0x1] ss:$0 sm:$0xff]  ;;  %v1426_v55 = vpack.c.bf16 %v1196_v52, %v1195_v51  ;;  %v1198_v57 = vld [vmem:[%s1953_s5 + $0x68] sm:$0xff]  ;;  %v1199_v59 = vld [vmem:[%s1953_s5 + $0x70] sm:$0xff]  ;;  %p1517_p0 = pneg %p1516_p13  ;;  %p1523_p3 = por %p1522_p2, %p1521_p1 }
  0x27   : > { %1419 = vmatprep.subr.bf16.mxu1 %v1579_v3  ;;  %v1197_v56 = vld [vmem:[%s1953_s5 + $0x60] sm:$0xff]  ;;  %v1200_v60 = vld [vmem:[%s1953_s5 + $0x78] sm:$0xff]  ;;  %v1210_v0 = vld [vmem:[%s1951_s3 + $0x28] sm:$0xff] }
  0x28   : > { %1400 = vmatpush3.bf16.msra.mxu0 %v1399_v20  ;;  %v1429_v58 = vpack.c.bf16 %v1198_v57, %v1197_v56  ;;  %v1432_v61 = vpack.c.bf16 %v1200_v60, %v1199_v59  ;;  %v1209_v63 = vld [vmem:[%s1951_s3 + $0x20] sm:$0xff]  ;;  %v1206_v4 = vld [vmem:[%s1950_s2 + $0x48] sm:$0xff]  ;;  %v1207_v7 = vld [vmem:[%s1950_s2 + $0x50] sm:$0xff]  ;;  %p1524_p4 = pnand %p1523_p3, %p1517_p0 }
  0x29   : > { %1401 = vmatprep.subr.bf16.mxu0 %v1579_v3  ;;  %v1435_v1 = vpack.c.bf16 %v1210_v0, %v1209_v63  ;;  %v1205_v2 = vld [vmem:[%s1950_s2 + $0x40] sm:$0xff]  ;;  %v1208_v8 = vld [vmem:[%s1950_s2 + $0x58] sm:$0xff]  ;;  %v1217_v27 = vld [vmem:[%s1953_s5 + $0x90] sm:$0xff] }
  0x2a   : > { %1421 = vmatpush3.bf16.msra.mxu1 %v1420_v21  ;;  %v1438_v6 = vpack.c.bf16 %v1206_v4, %v1205_v2  ;;  %v1441_v9 = vpack.c.bf16 %v1208_v8, %v1207_v7  ;;  %v1202_v13 = vld [vmem:[%s1954_s6 + $0x1] ss:$0 sm:$0xff]  ;;  %v1220_v30 = vld [vmem:[%s1953_s5 + $0xa8] sm:$0xff]  ;;  %v1221_v32 = vld [vmem:[%s1953_s5 + $0xb0] sm:$0xff] }
  0x2b   : > { %1297 = vmatmul.mubr.msk.f32.vlgmr.msra.gmra.mrb[2].mxu0 %vm380_vm3, %v1745_v22  ;;  %1434 = vmatprep.subr.bf16.mxu1 %v1579_v3  ;;  %v1215_v24 = vld [vmem:[%s1953_s5 + $0x80] sm:$0xff]  ;;  %v1222_v33 = vld [vmem:[%s1953_s5 + $0xb8] sm:$0xff] }
  0x2c   : > { %1315 = vmatprep.mubr.msk.f32.mxu0 %vm1580_vm1, %v1581_v5  ;;  %1403 = vmatpush3.bf16.msra.mxu0 %v1402_v25  ;;  %v1216_v25 = vld [vmem:[%s1953_s5 + $0x88] sm:$0xff]  ;;  %v1219_v29 = vld [vmem:[%s1953_s5 + $0xa0] sm:$0xff] }
  0x2d   : > { %1334 = vmatmul.mubr.msk.f32.vlgmr.msra.gmra.mrb[2].mxu1 %vm380_vm3, %v1745_v22  ;;  %1404 = vmatprep.subr.bf16.mxu0 %v1579_v3  ;;  %v1444_v26 = vpack.c.bf16 %v1216_v25, %v1215_v24 }
  0x2e   : > { %1359 = vmatprep.mubr.msk.f32.mxu1 %vm1580_vm1, %v1581_v5  ;;  %1436 = vmatpush3.bf16.msra.mxu1 %v1435_v1 }
  0x2f   : > { %1437 = vmatprep.subr.bf16.mxu1 %v1579_v3 }
  0x30   : > { %1406 = vmatpush3.bf16.msra.mxu0 %v1405_v28 }
  0x31   : > { %1407 = vmatprep.subr.bf16.mxu0 %v1579_v3  ;;  %1360 = vmatmul.mubr.msk.f32.vlgmr.msra.gmra.mrb[4].mxu1 %vm306_vm2, %v1713_v10 }
  0x32   : > { %1439 = vmatpush3.bf16.msra.mxu1 %v1438_v6  ;;  %1370 = vmatprep.mubr.msk.f32.mxu1 %vm1580_vm1, %v1581_v5 }
  0x33   : > { %1440 = vmatprep.subr.bf16.mxu1 %v1579_v3 }
  0x34   : > { %1409 = vmatpush3.bf16.msra.mxu0 %v1408_v31  ;;  %v1450_v31 = vpack.c.bf16 %v1220_v30, %v1219_v29 }
  0x35   : > { %1410 = vmatprep.subr.bf16.mxu0 %v1579_v3 }
  0x36   : > { %1442 = vmatpush3.bf16.msra.mxu1 %v1441_v9 }
  0x37   : > { %1443 = vmatprep.subr.bf16.mxu1 %v1579_v3 }
  0x38   : > { %1412 = vmatpush3.bf16.msra.mxu0 %v1411_v34  ;;  %v1453_v34 = vpack.c.bf16 %v1222_v33, %v1221_v32 }
  0x39   : > { %1422 = vmatprep.subr.bf16.mxu0 %v1579_v3 }
  0xf6   : > { %v376_v35 = vpop.f32.mrb[0].mxu0 }
  0xf7   : > { %v1287_v36 = vpop.f32.mrb[1].mxu0 }
  0xf8   : > { %v632_v37 = vpop.f32.mrb[0].mxu1  ;;  %v1582_v36 = vmov 0  }
  0xf9   : > { %v1324_v38 = vpop.f32.mrb[1].mxu1  ;;  %1499 = vset.pattern.permute.xlu0 %v1582_v36 }
  0xfe   : > { %v450_v39 = vpop.f32.mrb[2].mxu0 }
  0xff   : > { %v451_v41 = vadd.f32 %v450_v39, %v376_v35  ;;  %v1298_v42 = vpop.f32.mrb[3].mxu0  ;;  %v299_v35 = vld [vmem:[%s1685_s22] sm:$0xff] }
 0x100   : > { %v702_v43 = vpop.f32.mrb[2].mxu1  ;;  %1070 = vperm.xlu0 %1499, %v299_v35   ;;  %v1214_v39 = vld [vmem:[%s1952_s4 + $0x2] ss:$0 sm:$0xff] }
 0x101   : > { %v461_v44 = vadd.f32 %v1179_v40, %v451_v41  ;;  %v703_v45 = vadd.f32 %v702_v43, %v632_v37  ;;  %v1335_v46 = vpop.f32.mrb[3].mxu1  ;;  %v1074_v37 = vsub.f32 1.0, %v299_v35 }
 0x103   : > { %1500 = vtanh.f32 %v461_v44  ;;  %v714_v54 = vadd.f32 %v1192_v50, %v703_v45  ;;  %v1224_v50 = vld [vmem:[%s1954_s6 + $0x2] ss:$0 sm:$0xff] }
 0x104   : > { %v887_v21 = vpop.f32.mrb[4].mxu1  ;;  %1077 = vperm.xlu0 %1499, %v1074_v37  }
 0x105   : > { %1502 = vtanh.f32 %v714_v54  ;;  %v1361_v23 = vpop.f32.mrb[5].mxu1 }
 0x10d   : > { %v1501_v53 = vpop.eup %1500 }
 0x10e   : > { %1316 = vmatmul.mubr.msk.f32.vlgmr.msra.gmra.mrb[4].mxu0 %vm478_vm4, %v1501_v53 }
 0x10f   : > { %1424 = vmatpush3.bf16.msra.mxu0 %v1423_v49  ;;  %1352 = vmatprep.mubr.msk.f32.mxu0 %vm1580_vm1, %v1581_v5  ;;  %v1503_v62 = vpop.eup %1502 }
 0x110   : > { %1425 = vmatprep.subr.bf16.mxu0 %v1579_v3 }
 0x113   : > { %1427 = vmatpush3.bf16.msra.mxu0 %v1426_v55 }
 0x114   : > { %1428 = vmatprep.subr.bf16.mxu0 %v1579_v3 }
 0x117   : > { %1430 = vmatpush3.bf16.msra.mxu0 %v1429_v58 }
 0x118   : > { %1431 = vmatprep.subr.bf16.mxu0 %v1579_v3 }
 0x11b   : > { %1433 = vmatpush3.bf16.msra.mxu0 %v1432_v61 }
 0x11e   : > { %1353 = vmatmul.mubr.msk.f32.vlgmr.msra.gmra.mrb[6].mxu0 %vm478_vm4, %v1503_v62 }
 0x17f   : > { %v1071_v49 = vpop.permute.xlu0 %1070 }
 0x183   : > { %v1078_v57 = vpop.permute.xlu0 %1077 }
 0x184   : > { %v1080_v60 = vmul.f32 %v1078_v57, %v1745_v22 }
 0x1e1   : > { %v548_v11 = vpop.f32.mrb[4].mxu0 }
 0x1e2   : > { %v1317_v12 = vpop.f32.mrb[5].mxu0 }
 0x1f1   : > { %v802_v14 = vpop.f32.mrb[6].mxu0 }
 0x1f2   : > { %v803_v15 = vadd.f32 %v1202_v13, %v802_v14  ;;  %v1354_v16 = vpop.f32.mrb[7].mxu0 }
 0x1f4   : > { %v1204_v10 = vmul.f32 -1.442695, %v803_v15 }
 0x1f6   : > { %1504 = vpow2.f32 %v1204_v10 }
 0x200   : > { %v1505_v17 = vpop.eup %1504 }
 0x201   : > { %v809_v18 = vadd.f32 1.0, %v1505_v17 }
 0x203   : > { %1506 = vrcp.f32 %v809_v18 }
 0x20d   : > { %v1507_v19 = vpop.eup %1506 }
 0x20e   : > { %v812_v20 = vmul.f32 %v1507_v19, %v1745_v22 }
 0x210   : > { %1371 = vmatmul.mubr.msk.f32.vlgmr.msra.gmra.mrb[6].mxu1 %vm380_vm3, %v812_v20 }
 0x211   : > { %1389 = vmatprep.mubr.msk.f32.mxu1 %vm1580_vm1, %v1581_v5  ;;  %1445 = vmatpush3.bf16.msra.mxu1 %v1444_v26  ;;  %v1218_v5 = vld [vmem:[%s1953_s5 + $0x98] sm:$0xff] }
 0x212   : > { %1446 = vmatprep.subr.bf16.mxu1 %v1579_v3  ;;  %v1447_v28 = vpack.c.bf16 %v1218_v5, %v1217_v27 }
 0x215   : > { %1448 = vmatpush3.bf16.msra.mxu1 %v1447_v28 }
 0x216   : > { %1449 = vmatprep.subr.bf16.mxu1 %v1579_v3 }
 0x219   : > { %1451 = vmatpush3.bf16.msra.mxu1 %v1450_v31 }
 0x21a   : > { %1452 = vmatprep.subr.bf16.mxu1 %v1579_v3  ;;  %v1180_v3 = vld [vmem:[%s1954_s6] ss:$0 sm:$0xff] }
 0x21b   : > { %v549_v44 = vadd.f32 %v1180_v3, %v548_v11 }
 0x21d   : > { %1454 = vmatpush3.bf16.msra.mxu1 %v1453_v34  ;;  %v1182_v45 = vmul.f32 -1.442695, %v549_v44 }
 0x2e3   : > { %v960_v38 = vpop.f32.mrb[6].mxu1 }
 0x2e4   : > { %v961_v40 = vadd.f32 %v960_v38, %v887_v21  ;;  %v1372_v41 = vpop.f32.mrb[7].mxu1 }
 0x2e6   : > { %v972_v42 = vadd.f32 %v1214_v39, %v961_v40 }
 0x2e8   : > { %1508 = vtanh.f32 %v972_v42 }
 0x2e9   : > { %1510 = vpow2.f32 %v1182_v45 }
 0x2f2   : > { %v1509_v43 = vpop.eup %1508 }
 0x2f3   : > { %1390 = vmatmul.mubr.msk.f32.vlgmr.msra.gmra.mrb[8].mxu1 %vm478_vm4, %v1509_v43  ;;  %v1511_v46 = vpop.eup %1510 }
 0x2f4   : > { %v555_v47 = vadd.f32 1.0, %v1511_v46 }
 0x2f6   : > { %1512 = vrcp.f32 %v555_v47 }
 0x300   : > { %v1513_v48 = vpop.eup %1512 }
 0x301   : > { %v1064_v53 = vsub.f32 1.0, %v1513_v48  ;;  %v1066_v56 = vmul.f32 %v1513_v48, %v1745_v22 }
 0x3c6   : > { %v1060_v51 = vpop.f32.mrb[8].mxu1 }
 0x3c7   : > { %v1061_v52 = vadd.f32 %v1224_v50, %v1060_v51  ;;  %v1391_v54 = vpop.f32.mrb[9].mxu1 }
 0x3c9   : > { %v1065_v55 = vmul.f32 %v1064_v53, %v1061_v52 }
 0x3cb   : > { %v1067_v58 = vadd.f32 %v1066_v56, %v1065_v55 }
 0x3cd   : > { %v1073_v59 = vmul.f32 %v1071_v49, %v1067_v58 }
 0x3cf   : > { %v1081_v61 = vadd.f32 %v1080_v60, %v1073_v59 }
 0x3d1   : > { %1082 = vst.msk [vmem:[#allocation2] sm:$0xff] %vm380_vm3, %v1081_v61  ;;  %1083 = vst.msk [vmem:[%s282_s23] sm:$0xff] %vm380_vm3, %v1081_v61 }
 0x3d2   : > { %1527 = shalt.err (!%p1524_p4)
}
 0x3d3   : > { %s1528_s13 = scalar_lea.hbm %s1900_s19, 128  ;;  %s1532_s22 = scalar_lea.hbm %s1955_s7, 1024 }
 0x3d4   : > { %p1529_p7 = scmp.ne.s32.totalorder %s1900_s19, %s1528_s13  ;;  %p1533_p10 = scmp.lt.u32.totalorder %s1900_s19, %s1955_s7 }
 0x3d5   : > { %p1534_p11 = scmp.lt.u32.totalorder %s1532_s22, %s1528_s13  ;;  %p1536_p13 = scmp.lt.u32.totalorder %s1528_s13, %s1900_s19 }
 0x3d6   : > { %p1530_p8 = pnand %p1529_p7, %p1662_p5 }
 0x3d7   : > { %p1535_p12 = por %p1534_p11, %p1533_p10 }
 0x3d8   : > { %p1531_p9 = pneg %p1530_p8 }
 0x3d9   : > { %p1537_p0 = por %p1536_p13, %p1535_p12 }
 0x3db   : > { %p1538_p1 = pnand %p1537_p0, %p1531_p9 }
 0x3dd   : > { %1541 = shalt.err (!%p1538_p1)
}
 0x3de   : > { %1455 = dma.vmem_to_hbm [thread:$0]  (%p1662_p5), %s1902_s20, 128, %s1900_s19, %s1085_s28  }
 0x3df PF: > { %p1461_p2 = scmp.ge.s32.totalorder %s1576_s27, 2  ;;  %s1110_s21 = sand.u32 1, %s1564_s24  }
 0x3e0   : > { %s1111_s29 = scalar_lea.sflag [#allocation4], %s1110_s21 }
 0x3e1   : > { %p1458_p3 = pnand %p1461_p2, %p1666_p6 }
 0x3e3   : > { %1559 = dma.done.wait (!%p1458_p3), %s1111_s29, 128  }
 0x3e4   : > { %1561 = vsyncadd (!%p1458_p3), %s1111_s29, 4294967168  ;;  %p17_p4 = scmp.ge.s32.totalorder %s1649_s30, 10   ;;  %s1958_s24 = smov %s1568_s25 }
 0x3e5   : > { %s1959_s25 = smov %s1572_s26  ;;  %s1960_s26 = smov %s1660_s10 }
 0x3e6   : > { %s1961_s27 = smov %s1649_s30  ;;  %19 = sbr.rel (!%p17_p4) target bundleno = 3 (0x3), region = 100 }
 0x3ed   :  { %1116 = vsyncpa [#allocation4], 1 }
 0x3ee   :  { %1118 = vsyncpa [#allocation4 + $0x1], 1 }

</bundles_post_ra>
